<compile_context>
chip_gen: v7x
topology: tpu7x:2x2x1
jax: 0.10.0
libtpu: 0.0.40
codegen_flags: <defaults>
</compile_context>

<pallas_src>
import jax
import jax.numpy as jnp
from jax import lax
from jax.experimental import pallas as pl
from jax.experimental.pallas import tpu as pltpu


def _round_up(n, m):
    return (n + m - 1) // m * m


def mlp_kernel(x_ref, w1_ref, b1_ref, w2_ref, b2_ref, w3_ref, b3_ref, o_ref):
    # One batch tile per grid step; weights stay resident in VMEM across steps.
    x = x_ref[...].astype(jnp.bfloat16)                                   # (TB, D) cast on VPU (free)
    w1 = w1_ref[...].astype(jnp.bfloat16)                                 # (D, 32)
    h1 = jnp.dot(x, w1, preferred_element_type=jnp.float32)               # (TB, 32) f32 accum (MXU)
    h1 = jnp.maximum(h1 + b1_ref[...], 0.0)                               # bias+ReLU in f32 (VPU)

    w2 = w2_ref[...].astype(jnp.bfloat16)                                 # (32, 64)
    h2 = jnp.dot(h1.astype(jnp.bfloat16), w2,
                 preferred_element_type=jnp.float32)                      # (TB, 64) f32 accum (MXU)
    h2 = jnp.maximum(h2 + b2_ref[...], 0.0)                               # f32 (VPU)

    # Layer 3 (64 -> 1): compute transposed so the result is lane-dense.
    # (1,64) contracted with (TB,64) on the last dims -> (1, TB).
    w3r = w3_ref[...].astype(jnp.bfloat16)                                # (1, 64)
    outT = lax.dot_general(
        w3r, h2.astype(jnp.bfloat16),
        dimension_numbers=(((1,), (1,)), ((), ())),
        preferred_element_type=jnp.float32)                               # (1, TB)
    outT = outT + b3_ref[...]                                             # (1,1) broadcast
    o_ref[...] = outT.reshape(o_ref.shape).astype(o_ref.dtype)            # (1, 1, TB) lane-dense store


def _resident(arr):
    """Full-block spec, same block every grid step => stays in VMEM."""
    zeros = (0,) * arr.ndim
    return pl.BlockSpec(arr.shape, lambda i, _z=zeros: _z)


def my_model_forward(x, params, *, block_b=8192):
    """x: (B, input_dim) -> (B, 1) float32."""
    w1, b1, w2, b2, w3, b3 = params
    B, D = x.shape

    # Tiny reshapes only (no copy of x in the wrapper). Biases stay f32 for
    # the f32 bias-add + ReLU on the VPU (safe on v5e's non-bf16 VPU).
    w3_row = w3.reshape(1, -1)                      # (1, 64)
    b1r = b1.reshape(1, -1).astype(jnp.float32)     # (1, 32)
    b2r = b2.reshape(1, -1).astype(jnp.float32)     # (1, 64)
    b3r = b3.reshape(1, 1).astype(jnp.float32)      # (1, 1)

    # Batch tile: big enough to amortize the ~0.35 us per-step overhead
    # (f32 tile at tb=8192 is ~3.8 MiB, ~7.6 MiB double-buffered -> fits every
    # generation's scoped VMEM), capped at ceil(B/2) so v7x's 2 TCs both get
    # blocks, and rounded up to a multiple of 8 (sublane granule).
    half = -(-B // 2)
    tb = _round_up(min(block_b, half), 8)
    grid_n = pl.cdiv(B, tb)                         # last block may be partial (masked/sliced)

    out = pl.pallas_call(
        mlp_kernel,
        out_shape=jax.ShapeDtypeStruct((grid_n, 1, tb), jnp.float32),
        grid=(grid_n,),
        in_specs=[
            pl.BlockSpec((tb, D), lambda i: (i, 0)),   # x: streamed, double-buffered
            _resident(w1), _resident(b1r),
            _resident(w2), _resident(b2r),
            _resident(w3_row), _resident(b3r),
        ],
        out_specs=pl.BlockSpec((1, 1, tb), lambda i: (i, 0, 0)),   # lane-dense output slab
        compiler_params=pltpu.CompilerParams(
            dimension_semantics=("parallel",),   # batch blocks across both TCs on v7x
        ),
    )(x, w1, b1r, w2, b2r, w3_row, b3r)

    # (grid_n, 1, tb) -> flat batch order -> (B, 1); drops the ragged tail.
    return out.reshape(grid_n * tb, 1)[:B]


def init_params(key, input_dim=116):
    """Deterministic synthetic init (same shapes as the PyTorch module)."""
    ks = jax.random.split(key, 6)

    def lin(kw, kb, fan_in, fan_out):
        bound = 1.0 / jnp.sqrt(fan_in)
        w = jax.random.uniform(kw, (fan_in, fan_out), jnp.float32, -bound, bound)
        b = jax.random.uniform(kb, (fan_out,), jnp.float32, -bound, bound)
        return w, b

    w1, b1 = lin(ks[0], ks[1], input_dim, 32)
    w2, b2 = lin(ks[2], ks[3], 32, 64)
    w3, b3 = lin(ks[4], ks[5], 64, 1)
    return (w1, b1, w2, b2, w3, b3)


def reference_forward(x, params):
    """Pure-JAX reference mirroring the kernel's bf16-input / f32-accum math."""
    w1, b1, w2, b2, w3, b3 = params
    xb = x.astype(jnp.bfloat16)
    h1 = jnp.maximum(
        jnp.dot(xb, w1.astype(jnp.bfloat16), preferred_element_type=jnp.float32)
        + b1.reshape(1, -1), 0.0)
    h2 = jnp.maximum(
        jnp.dot(h1.astype(jnp.bfloat16), w2.astype(jnp.bfloat16),
                preferred_element_type=jnp.float32)
        + b2.reshape(1, -1), 0.0)
    out = jnp.dot(h2.astype(jnp.bfloat16), w3.astype(jnp.bfloat16).reshape(-1, 1),
                  preferred_element_type=jnp.float32)
    return out + b3.reshape(1, 1)


if __name__ == "__main__":
    key = jax.random.PRNGKey(0)
    k_x, k_p, k_x2 = jax.random.split(key, 3)

    input_dim = 116
    params = init_params(k_p, input_dim)

    # Small single-block case.
    batch = 8
    x = jax.random.normal(k_x, (batch, input_dim), jnp.float32)
    out = jax.block_until_ready(my_model_forward(x, params))
    ref = reference_forward(x, params)
    assert out.shape == (batch, 1), out.shape
    assert jnp.allclose(out, ref, atol=2e-3, rtol=2e-3), "mismatch vs reference (B=8)"

    # Multi-block case with a ragged tail (exercises the cdiv grid + boundary masking).
    batch2 = 200
    x2 = jax.random.normal(k_x2, (batch2, input_dim), jnp.float32)
    out2 = jax.block_until_ready(my_model_forward(x2, params, block_b=64))
    ref2 = reference_forward(x2, params)
    assert out2.shape == (batch2, 1), out2.shape
    assert jnp.allclose(out2, ref2, atol=2e-3, rtol=2e-3), "mismatch vs reference (B=200)"

    print("KERNEL_OK")
</pallas_src>

<mosaic_0001>
module attributes {stable_mosaic.version = 11 : i64} {
  func.func @mlp_kernel(%arg0: i32, %arg1: memref<8x116xf32, #tpu.memory_space<vmem>>, %arg2: memref<116x32xf32, #tpu.memory_space<vmem>>, %arg3: memref<1x32xf32, #tpu.memory_space<vmem>>, %arg4: memref<32x64xf32, #tpu.memory_space<vmem>>, %arg5: memref<1x64xf32, #tpu.memory_space<vmem>>, %arg6: memref<1x64xf32, #tpu.memory_space<vmem>>, %arg7: memref<1x1xf32, #tpu.memory_space<vmem>>, %arg8: memref<1x1x8xf32, #tpu.memory_space<vmem>>) attributes {dimension_semantics = [#tpu.dimension_semantics<parallel>], iteration_bounds = array<i64: 1>, scalar_prefetch = 0 : i64, scratch_operands = 0 : i64, tpu.core_type = #tpu.core_type<tc>, window_params = [{transform_indices = @transform_0, window_bounds = array<i64: 8, 116>}, {pipeline_mode = #tpu.pipeline_mode<synchronous>, transform_indices = @transform_1, window_bounds = array<i64: 116, 32>}, {pipeline_mode = #tpu.pipeline_mode<synchronous>, transform_indices = @transform_2, window_bounds = array<i64: 1, 32>}, {pipeline_mode = #tpu.pipeline_mode<synchronous>, transform_indices = @transform_3, window_bounds = array<i64: 32, 64>}, {pipeline_mode = #tpu.pipeline_mode<synchronous>, transform_indices = @transform_4, window_bounds = array<i64: 1, 64>}, {pipeline_mode = #tpu.pipeline_mode<synchronous>, transform_indices = @transform_5, window_bounds = array<i64: 1, 64>}, {pipeline_mode = #tpu.pipeline_mode<synchronous>, transform_indices = @transform_6, window_bounds = array<i64: 1, 1>}, {transform_indices = @transform_7, window_bounds = array<i64: 1, 1, 8>}]} {
    %c0 = arith.constant 0 : index
    %c0_0 = arith.constant 0 : index
    %0 = vector.load %arg1[%c0, %c0_0] : memref<8x116xf32, #tpu.memory_space<vmem>>, vector<8x116xf32>
    %1 = arith.truncf %0 : vector<8x116xf32> to vector<8x116xbf16>
    %c0_1 = arith.constant 0 : index
    %c0_2 = arith.constant 0 : index
    %2 = vector.load %arg2[%c0_1, %c0_2] : memref<116x32xf32, #tpu.memory_space<vmem>>, vector<116x32xf32>
    %3 = arith.truncf %2 : vector<116x32xf32> to vector<116x32xbf16>
    %cst = arith.constant dense<0.000000e+00> : vector<8x32xf32>
    %4 = tpu.matmul %1, %3, %cst {dimension_numbers = #tpu.dot_dimension_numbers<[1], [0], [0], [1], [0, 0, 1, 1], [], []>} : vector<8x116xbf16>, vector<116x32xbf16>, vector<8x32xf32> -> vector<8x32xf32>
    %c0_3 = arith.constant 0 : index
    %c0_4 = arith.constant 0 : index
    %5 = vector.load %arg3[%c0_3, %c0_4] : memref<1x32xf32, #tpu.memory_space<vmem>>, vector<1x32xf32>
    %6 = vector.broadcast %5 : vector<1x32xf32> to vector<8x32xf32>
    %7 = arith.addf %4, %6 : vector<8x32xf32>
    %cst_5 = arith.constant 0.000000e+00 : f32
    %8 = vector.broadcast %cst_5 : f32 to vector<8x32xf32>
    %9 = arith.maximumf %7, %8 : vector<8x32xf32>
    %c0_6 = arith.constant 0 : index
    %c0_7 = arith.constant 0 : index
    %10 = vector.load %arg4[%c0_6, %c0_7] : memref<32x64xf32, #tpu.memory_space<vmem>>, vector<32x64xf32>
    %11 = arith.truncf %10 : vector<32x64xf32> to vector<32x64xbf16>
    %12 = arith.truncf %9 : vector<8x32xf32> to vector<8x32xbf16>
    %cst_8 = arith.constant dense<0.000000e+00> : vector<8x64xf32>
    %13 = tpu.matmul %12, %11, %cst_8 {dimension_numbers = #tpu.dot_dimension_numbers<[1], [0], [0], [1], [0, 0, 1, 1], [], []>} : vector<8x32xbf16>, vector<32x64xbf16>, vector<8x64xf32> -> vector<8x64xf32>
    %c0_9 = arith.constant 0 : index
    %c0_10 = arith.constant 0 : index
    %14 = vector.load %arg5[%c0_9, %c0_10] : memref<1x64xf32, #tpu.memory_space<vmem>>, vector<1x64xf32>
    %15 = vector.broadcast %14 : vector<1x64xf32> to vector<8x64xf32>
    %16 = arith.addf %13, %15 : vector<8x64xf32>
    %cst_11 = arith.constant 0.000000e+00 : f32
    %17 = vector.broadcast %cst_11 : f32 to vector<8x64xf32>
    %18 = arith.maximumf %16, %17 : vector<8x64xf32>
    %c0_12 = arith.constant 0 : index
    %c0_13 = arith.constant 0 : index
    %19 = vector.load %arg6[%c0_12, %c0_13] : memref<1x64xf32, #tpu.memory_space<vmem>>, vector<1x64xf32>
    %20 = arith.truncf %19 : vector<1x64xf32> to vector<1x64xbf16>
    %21 = arith.truncf %18 : vector<8x64xf32> to vector<8x64xbf16>
    %cst_14 = arith.constant dense<0.000000e+00> : vector<1x8xf32>
    %22 = tpu.matmul %20, %21, %cst_14 {dimension_numbers = #tpu.dot_dimension_numbers<[1], [1], [0], [0], [0, 0, 1, 0], [], []>} : vector<1x64xbf16>, vector<8x64xbf16>, vector<1x8xf32> -> vector<1x8xf32>
    %c0_15 = arith.constant 0 : index
    %c0_16 = arith.constant 0 : index
    %23 = vector.load %arg7[%c0_15, %c0_16] : memref<1x1xf32, #tpu.memory_space<vmem>>, vector<1x1xf32>
    %24 = vector.broadcast %23 : vector<1x1xf32> to vector<1x8xf32>
    %25 = arith.addf %22, %24 : vector<1x8xf32>
    %26 = vector.shape_cast %25 : vector<1x8xf32> to vector<1x1x8xf32>
    %c0_17 = arith.constant 0 : index
    %c0_18 = arith.constant 0 : index
    %c0_19 = arith.constant 0 : index
    %27 = vector.load %arg8[%c0_17, %c0_18, %c0_19] : memref<1x1x8xf32, #tpu.memory_space<vmem>>, vector<1x1x8xf32>
    tpu.vector_store %arg8[%c0_17, %c0_18, %c0_19], %26 {strides = array<i32>} : memref<1x1x8xf32, #tpu.memory_space<vmem>>, vector<1x1x8xf32>,
    return
  }
  func.func @transform_0(%arg0: i32) -> (i32, i32) {
    %c0_i32 = arith.constant 0 : i32
    %c0_i32_0 = arith.constant 0 : i32
    return %arg0, %c0_i32 : i32, i32
  }
  func.func @transform_1(%arg0: i32) -> (i32, i32) {
    %c0_i32 = arith.constant 0 : i32
    %c0_i32_0 = arith.constant 0 : i32
    %c0_i32_1 = arith.constant 0 : i32
    return %c0_i32, %c0_i32_0 : i32, i32
  }
  func.func @transform_2(%arg0: i32) -> (i32, i32) {
    %c0_i32 = arith.constant 0 : i32
    %c0_i32_0 = arith.constant 0 : i32
    %c0_i32_1 = arith.constant 0 : i32
    return %c0_i32, %c0_i32_0 : i32, i32
  }
  func.func @transform_3(%arg0: i32) -> (i32, i32) {
    %c0_i32 = arith.constant 0 : i32
    %c0_i32_0 = arith.constant 0 : i32
    %c0_i32_1 = arith.constant 0 : i32
    return %c0_i32, %c0_i32_0 : i32, i32
  }
  func.func @transform_4(%arg0: i32) -> (i32, i32) {
    %c0_i32 = arith.constant 0 : i32
    %c0_i32_0 = arith.constant 0 : i32
    %c0_i32_1 = arith.constant 0 : i32
    return %c0_i32, %c0_i32_0 : i32, i32
  }
  func.func @transform_5(%arg0: i32) -> (i32, i32) {
    %c0_i32 = arith.constant 0 : i32
    %c0_i32_0 = arith.constant 0 : i32
    %c0_i32_1 = arith.constant 0 : i32
    return %c0_i32, %c0_i32_0 : i32, i32
  }
  func.func @transform_6(%arg0: i32) -> (i32, i32) {
    %c0_i32 = arith.constant 0 : i32
    %c0_i32_0 = arith.constant 0 : i32
    %c0_i32_1 = arith.constant 0 : i32
    return %c0_i32, %c0_i32_0 : i32, i32
  }
  func.func @transform_7(%arg0: i32) -> (i32, i32, i32) {
    %c0_i32 = arith.constant 0 : i32
    %c0_i32_0 = arith.constant 0 : i32
    %c0_i32_1 = arith.constant 0 : i32
    return %arg0, %c0_i32, %c0_i32_0 : i32, i32, i32
  }
}

</mosaic_0001>

<bundles_post_ra>
// kernel: tpu_custom_call.1
= control target key start
LH: loop header
LB: loop body
LE: loop exit
PB: predicated region body
PF: predicated region fallthrough
CT: control target
= control target key end

     0   :  { %s473_s0 = inlined_call_operand.vmem [shape: f32[8,116], index: 0, kind: input, shape index: {}]   ;;  %s474_s1 = inlined_call_operand.vmem [shape: f32[116,32], index: 1, kind: input, shape index: {}]   ;;  %s475_s2 = inlined_call_operand.vmem [shape: f32[1,32], index: 2, kind: input, shape index: {}]   ;;  %s476_s3 = inlined_call_operand.vmem [shape: f32[32,64], index: 3, kind: input, shape index: {}]   ;;  %s477_s4 = inlined_call_operand.vmem [shape: f32[1,64], index: 4, kind: input, shape index: {}]   ;;  %s478_s5 = inlined_call_operand.vmem [shape: f32[1,64], index: 5, kind: input, shape index: {}]   ;;  %s479_s6 = inlined_call_operand.<no memory space> [shape: f32[1,1], index: 6, kind: input, shape index: {}]   ;;  %s480_s7 = inlined_call_operand.hbm [shape: f32[1,1,8], index: 7, kind: output, shape index: {}]  }
   0x1   :  { %v12_v0 = vstv %s479_s6 }
   0x2   :  { %13 = vst [vmem:[#allocation2] sm:$0x1] %v12_v0 }
   0x3   :  { %v32_v1 = vld [vmem:[%s474_s1] sm:$0xff]  ;;  %v33_v2 = vld [vmem:[%s474_s1 + $0x8] sm:$0xff]  ;;  %v34_v3 = vld [vmem:[%s474_s1 + $0x10] sm:$0xff]  ;;  %v328_v4 = vmov 0.0   ;;  %vm329_vm0 = vmmov 0  }
   0x4   :  { %265 = vmatprep.subr.bf16.mxu0 %v328_v4  ;;  %v47_v5 = vpack.c.bf16 %v33_v2, %v32_v1  ;;  %v35_v6 = vld [vmem:[%s474_s1 + $0x18] sm:$0xff]  ;;  %281 = vmatprep.mubr.msk.bf16.mxu0 %vm329_vm0, %v328_v4  ;;  %v36_v8 = vld [vmem:[%s474_s1 + $0x20] sm:$0xff]  ;;  %v37_v9 = vld [vmem:[%s474_s1 + $0x28] sm:$0xff] }
   0x5   :  { %285 = vmatprep.subr.bf16.mxu1 %v328_v4  ;;  %289 = vmatprep.mubr.msk.bf16.mxu1 %vm329_vm0, %v328_v4  ;;  %v48_v7 = vpack.c.bf16 %v35_v6, %v34_v3 }
   0x6   :  { %266 = vmatpush3.bf16.msra.mxu0 %v47_v5 }
   0x7   :  { %267 = vmatprep.subr.bf16.mxu0 %v328_v4 }
   0x8   :  { %14 = vsyncpa [#allocation4], 0  ;;  %v49_v10 = vpack.c.bf16 %v37_v9, %v36_v8  ;;  %v38_v11 = vld [vmem:[%s474_s1 + $0x30] sm:$0xff]  ;;  %v39_v12 = vld [vmem:[%s474_s1 + $0x38] sm:$0xff]  ;;  %vm66_vm1 = vcmask 1041408   ;;  %vm62_vm2 = vcmask 949248   ;;  %v179_v55 = vlaneseq }
   0x9   :  { %v50_v13 = vpack.c.bf16 %v39_v12, %v38_v11  ;;  %v40_v14 = vld [vmem:[%s474_s1 + $0x40] sm:$0xff]  ;;  %v41_v15 = vld [vmem:[%s474_s1 + $0x48] sm:$0xff]  ;;  %v42_v17 = vld [vmem:[%s474_s1 + $0x50] sm:$0xff]  ;;  %vm125_vm3 = vcmask 261120   ;;  %v330_v43 = vmov 0   ;;  %vm183_vm4 = vcmask 523264  }
   0xa   :  { %268 = vmatpush3.bf16.msra.mxu0 %v48_v7  ;;  %v51_v16 = vpack.c.bf16 %v41_v15, %v40_v14  ;;  %v43_v18 = vld [vmem:[%s474_s1 + $0x58] sm:$0xff]  ;;  %v44_v20 = vld [vmem:[%s474_s1 + $0x60] sm:$0xff]  ;;  %v45_v21 = vld [vmem:[%s474_s1 + $0x68] sm:$0xff]  ;;  %303 = vset.pattern.permute.xlu0 %v330_v43  ;;  %v180_v56 = vshrl.u32 %v179_v55, 7  ;;  %vm230_vm5 = vcmask 57344  }
   0xb   :  { %269 = vmatprep.subr.bf16.mxu0 %v328_v4  ;;  %v52_v19 = vpack.c.bf16 %v43_v18, %v42_v17  ;;  %v46_v22 = vld [vmem:[%s474_s1 + $0x70] sm:$0xf]  ;;  %v53_v23 = vpack.c.bf16 %v45_v21, %v44_v20  ;;  %v30_v25 = vld [vmem:[%s473_s0] sm:$0xff]  ;;  %v112_v29 = vld [vmem:[%s476_s3 + $0x8] sm:$0xff] }
   0xc   :  { %v54_v24 = vpack.c.bf16 %v46_v22, %v46_v22  ;;  %v31_v27 = vpack.c.bf16 %v30_v25, %v30_v25  ;;  %v111_v28 = vld [vmem:[%s476_s3] sm:$0xff]  ;;  %v113_v31 = vld [vmem:[%s476_s3 + $0x10] sm:$0xff]  ;;  %v114_v32 = vld [vmem:[%s476_s3 + $0x18] sm:$0xff]  ;;  %v181_v57 = vsub.s32 0, %v180_v56 }
   0xd   :  { %v115_v30 = vpack.c.bf16 %v112_v29, %v111_v28  ;;  %v116_v33 = vpack.c.bf16 %v114_v32, %v113_v31  ;;  %v246_v34 = vld [vmem:[%s475_s2] ss:$0 sm:$0xff] }
   0xe   :  { %270 = vmatpush3.bf16.msra.mxu0 %v49_v10  ;;  %v68_v26 = vsel %vm66_vm1, %v54_v24, 0  ;;  %v173_v42 = vld [vmem:[#allocation2] sm:$0x1] }
   0xf   :  { %271 = vmatprep.subr.bf16.mxu0 %v328_v4  ;;  %286 = vmatpush3.bf16.msra.mxu1 %v115_v30  ;;  %v248_v44 = vld [vmem:[%s477_s4] ss:$0 sm:$0xff]  ;;  %s331_s4 = smov [#allocation3]  }
  0x10   :  { %287 = vmatprep.subr.bf16.mxu1 %v328_v4  ;;  %176 = vperm.xlu0 %303, %v173_v42   ;;  %v170_v53 = vld [vmem:[%s478_s5] sm:$0x1]  ;;  %s238_s20 = sshll.u32 %s331_s4, 4  ;;  %s239_s20 = int_to_ptr.vmem [resolvable:$true] %s238_s20 }
  0x11   :  { %v171_v54 = vpack.c.bf16 %v170_v53, %v170_v53  ;;  %s304_s21 = scalar_lea.vmem %s239_s20, 16  ;;  %s308_s5 = scalar_lea.vmem %s239_s20, 32 }
  0x12   :  { %272 = vmatpush3.bf16.msra.mxu0 %v50_v13  ;;  %p305_p0 = scmp.ne.s32.totalorder %s239_s20, %s304_s21  ;;  %p309_p1 = scmp.lt.s32.totalorder %s239_s20, %s239_s20 }
  0x13   :  { %273 = vmatprep.subr.bf16.mxu0 %v328_v4  ;;  %288 = vmatpush3.bf16.msra.mxu1 %v116_v33  ;;  %p310_p2 = scmp.lt.s32.totalorder %s308_s5, %s304_s21 }
  0x14   :  { %293 = vmatprep.subr.bf16.mxu1 %v328_v4 }
  0x15   :  { %p311_p3 = por %p310_p2, %p309_p1 }
  0x16   :  { %274 = vmatpush3.bf16.msra.mxu0 %v51_v16 }
  0x17   :  { %275 = vmatprep.subr.bf16.mxu0 %v328_v4  ;;  %p312_p4 = pnand %p311_p3, %p305_p0 }
  0x1a   :  { %276 = vmatpush3.bf16.msra.mxu0 %v52_v19 }
  0x1b   :  { %277 = vmatprep.subr.bf16.mxu0 %v328_v4 }
  0x1e   :  { %278 = vmatpush3.bf16.msra.mxu0 %v53_v23 }
  0x1f   :  { %279 = vmatprep.subr.bf16.mxu0 %v328_v4 }
  0x22   :  { %280 = vmatpush3.bf16.msra.mxu0 %v68_v26 }
  0x25   :  { %282 = vmatmul.mubr.msk.bf16.vlgmr.msra.gmra.mrb[0].mxu0 %vm62_vm2, %v31_v27 }
  0x8f   :  { %v177_v58 = vpop.permute.xlu0 %176 }
  0x90   :  { %v182_v59 = vrot.slane %v177_v58, %v181_v57 }
  0xf8   :  { %v104_v35 = vpop.f32.mrb[0].mxu0 }
  0xf9   :  { %v105_v36 = vadd.f32 %v246_v34, %v104_v35  ;;  %v283_v37 = vpop.f32.mrb[1].mxu0 }
  0xfa   :  { %v107_v38 = vpop.f32.mrb[2].mxu0 }
  0xfb   :  { %v110_v39 = vmax.f32 %v105_v36, 0.0  ;;  %v284_v40 = vpop.f32.mrb[3].mxu0 }
  0xfd   :  { %v117_v41 = vpack.c.bf16 %v110_v39, %v110_v39 }
  0xff   :  { %290 = vmatmul.mubr.msk.bf16.vlgmr.msra.gmra.mrb[0].mxu1 %vm125_vm3, %v117_v41 }
 0x100   :  { %295 = vmatprep.mubr.msk.bf16.mxu1 %vm329_vm0, %v328_v4 }
 0x1d2   :  { %v163_v45 = vpop.f32.mrb[0].mxu1 }
 0x1d3   :  { %v164_v46 = vadd.f32 %v248_v44, %v163_v45  ;;  %v291_v47 = vpop.f32.mrb[1].mxu1 }
 0x1d4   :  { %v166_v48 = vpop.f32.mrb[2].mxu1 }
 0x1d5   :  { %v169_v49 = vmax.f32 %v164_v46, 0.0  ;;  %v292_v50 = vpop.f32.mrb[3].mxu1 }
 0x1d7   :  { %v172_v51 = vpack.c.bf16 %v169_v49, %v169_v49 }
 0x1d9   :  { %v188_v52 = vsel %vm183_vm4, %v172_v51, 0 }
 0x1da   :  { %294 = vmatpush3.bf16.xpose.msra.mxu1 %v188_v52 }
 0x1e1   :  { %296 = vmatmul.mubr.msk.bf16.vlgmr.msra.gmra.mrb[4].mxu1 %vm183_vm4, %v171_v54 }
 0x2b4   :  { %v224_v60 = vpop.f32.mrb[4].mxu1 }
 0x2b5   :  { %v225_v61 = vadd.f32 %v224_v60, %v182_v59  ;;  %v297_v62 = vpop.f32.mrb[5].mxu1 }
 0x2b6   :  { %v227_v63 = vpop.f32.mrb[6].mxu1 }
 0x2b7   :  { %v298_v0 = vpop.f32.mrb[7].mxu1  ;;  %231 = vst.msk [vmem:[#allocation3] sm:$0x1] %vm230_vm5, %v225_v61 }
 0x2b8   :  { %315 = shalt.err (!%p312_p4)
}
 0x2b9   :  { %s316_s24 = scalar_lea.hbm %s480_s7, 16 }
 0x2ba   :  { %p317_p5 = scmp.ne.s32.totalorder %s480_s7, %s316_s24  ;;  %p320_p6 = scmp.lt.u32.totalorder %s316_s24, %s480_s7 }
 0x2bc   :  { %p322_p7 = pnand %p320_p6, %p317_p5 }
 0x2be   :  { %325 = shalt.err (!%p322_p7)
}
 0x2bf   :  { %241 = dma.vmem_to_hbm [thread:$0]  %s239_s20, 16, %s480_s7, [#allocation4]  }
 0x2c0   :  { %326 = dma.done.wait [#allocation4], 16  }
 0x2c1   :  { %327 = vsyncadd [#allocation4], 4294967280 }
 0x2c2   :  { %245 = vsyncpa [#allocation4], 1 }

</bundles_post_ra>
